<compile_context>
chip_gen: v7x
topology: tpu7x:2x2x1
jax: 0.10.0
libtpu: 0.0.40
codegen_flags: <defaults>
</compile_context>

<pallas_src>
import math

import jax
import jax.numpy as jnp
from jax.experimental import pallas as pl
from jax.experimental.pallas import tpu as pltpu

_LANE = 128
_SUBLANE = 8
_VMEM_BUDGET = 40 * 1024 * 1024   # conservative: v7x has only 64 MiB physical VMEM


def _round_up(x, m):
    return ((x + m - 1) // m) * m


def _tl_kernel_bias(x_ref, w_ref, b_ref, o_ref):
    # x_ref: (TILE_M, K), w_ref: (K, N_pad), b_ref/o_ref: (TILE_M, N_pad)
    y = jnp.dot(x_ref[...], w_ref[...], preferred_element_type=jnp.float32)
    o_ref[...] = (y + b_ref[...]).astype(o_ref.dtype)


def _tl_kernel_nobias(x_ref, w_ref, o_ref):
    o_ref[...] = jnp.dot(
        x_ref[...], w_ref[...], preferred_element_type=jnp.float32
    ).astype(o_ref.dtype)


def _vmem_estimate(tile_m, k, n_pad, itemsize):
    x_blk = tile_m * k * itemsize
    w_blk = k * n_pad * itemsize
    b_blk = tile_m * n_pad * itemsize
    o_blk = tile_m * n_pad * itemsize
    # Worst case: everything double-buffered by the pipeline.
    return 2 * (x_blk + w_blk + b_blk + o_blk)


def _build_call(m_pad, k, n_pad, tile_m, has_bias, out_dtype, vmem_limit,
                single_buffer_weight):
    grid = (m_pad // tile_m,)
    x_spec = pl.BlockSpec((tile_m, k), lambda i: (i, 0))
    o_spec = pl.BlockSpec((tile_m, n_pad), lambda i: (i, 0))
    if single_buffer_weight:
        # Constant-index weight: the second pipeline buffer is pure VMEM waste.
        w_spec = pl.BlockSpec((k, n_pad), lambda i: (0, 0),
                              pipeline_mode=pl.Buffered(1))
    else:
        w_spec = pl.BlockSpec((k, n_pad), lambda i: (0, 0))

    in_specs = [x_spec, w_spec]
    kernel = _tl_kernel_nobias
    if has_bias:
        in_specs = in_specs + [pl.BlockSpec((tile_m, n_pad), lambda i: (i, 0))]
        kernel = _tl_kernel_bias

    return pl.pallas_call(
        kernel,
        out_shape=jax.ShapeDtypeStruct((m_pad, n_pad), out_dtype),
        grid_spec=pltpu.PrefetchScalarGridSpec(
            num_scalar_prefetch=0,
            grid=grid,
            in_specs=in_specs,
            out_specs=o_spec,
        ),
        compiler_params=pltpu.CompilerParams(
            dimension_semantics=("parallel",),
            vmem_limit_bytes=vmem_limit,
        ),
    )


def tensor_linear(x, weight, bias=None, *, tile_m=512):
    """y[i, j, r] = sum_k x[i, j, k] * weight[k, r] (+ bias[i, j, r])."""
    num_nodes, dim_2, dim_in = x.shape
    k_w, dim_out = weight.shape
    assert k_w == dim_in
    out_dtype = x.dtype
    itemsize = jnp.dtype(out_dtype).itemsize

    # ---- Flatten (num_nodes, dim_2) -> M; pad N up to a lane-dense multiple of 128.
    m = num_nodes * dim_2
    n_pad = _round_up(dim_out, _LANE)

    # Pick TILE_M: as large as useful (<= requested tile_m), shrunk to fit VMEM.
    tile = min(_round_up(tile_m, _SUBLANE), _round_up(m, _SUBLANE))
    while tile > _SUBLANE and _vmem_estimate(tile, dim_in, n_pad, itemsize) > _VMEM_BUDGET:
        tile = _round_up(max(tile // 2, _SUBLANE), _SUBLANE)
    # TODO(synk): add K/N tiling with an f32 VMEM accumulator (reduction axis
    # last, "arbitrary", init/finalize via pl.when) for weights too large for VMEM.

    m_pad = _round_up(m, tile)

    x2 = x.reshape(m, dim_in)
    if m_pad != m:
        x2 = jnp.pad(x2, ((0, m_pad - m), (0, 0)))
    w2 = weight
    if n_pad != dim_out:
        w2 = jnp.pad(weight, ((0, 0), (0, n_pad - dim_out)))

    args = [x2, w2]
    has_bias = bias is not None
    if has_bias:
        b2 = bias.reshape(m, dim_out)
        if (m_pad != m) or (n_pad != dim_out):
            b2 = jnp.pad(b2, ((0, m_pad - m), (0, n_pad - dim_out)))
        args.append(b2)

    est = _vmem_estimate(tile, dim_in, n_pad, itemsize)
    vmem_limit = int(min(max(est + (8 << 20), 16 << 20), 48 << 20))

    try:
        call = _build_call(m_pad, dim_in, n_pad, tile, has_bias, out_dtype,
                           vmem_limit, single_buffer_weight=True)
        y = call(*args)
    except Exception:
        # pipeline_mode=pl.Buffered(1) not supported by this jax build:
        # fall back to the default (double-buffered) weight spec.
        call = _build_call(m_pad, dim_in, n_pad, tile, has_bias, out_dtype,
                           vmem_limit, single_buffer_weight=False)
        y = call(*args)

    return y[:m, :dim_out].reshape(num_nodes, dim_2, dim_out)


def init_tensor_linear_params(key, dim_in, dim_out, num_nodes, dim_2, bias=True):
    """Deterministic init mirroring reset_parameters(): U(-stdv, stdv), stdv = 1/sqrt(dim_out)."""
    stdv = 1.0 / math.sqrt(dim_out)
    k_w, k_b = jax.random.split(key)
    weight = jax.random.uniform(k_w, (dim_in, dim_out), jnp.float32, -stdv, stdv)
    b = (jax.random.uniform(k_b, (num_nodes, dim_2, dim_out), jnp.float32, -stdv, stdv)
         if bias else None)
    return weight, b


if __name__ == "__main__":
    # Small shapes implied by the forward: input is (num_nodes, dim_2, dim_in).
    num_nodes, dim_2, dim_in, dim_out = 4, 8, 32, 64

    key = jax.random.PRNGKey(0)
    k_x, k_p = jax.random.split(key)
    x = jax.random.normal(k_x, (num_nodes, dim_2, dim_in), dtype=jnp.float32)
    weight, bias = init_tensor_linear_params(k_p, dim_in, dim_out, num_nodes, dim_2, bias=True)

    # Bias path.
    y = tensor_linear(x, weight, bias)
    y = jax.block_until_ready(y)
    y_ref = jnp.einsum("ijk,kr->ijr", x, weight) + bias
    assert y.shape == (num_nodes, dim_2, dim_out)
    assert jnp.allclose(y, y_ref, atol=1e-5, rtol=1e-5)

    # No-bias path.
    y_nb = tensor_linear(x, weight, None)
    y_nb = jax.block_until_ready(y_nb)
    y_nb_ref = jnp.einsum("ijk,kr->ijr", x, weight)
    assert jnp.allclose(y_nb, y_nb_ref, atol=1e-5, rtol=1e-5)

    print("KERNEL_OK")
</pallas_src>

<mosaic_0001>
module attributes {stable_mosaic.version = 11 : i64} {
  func.func @_tl_kernel_bias(%arg0: i32, %arg1: memref<32x32xf32, #tpu.memory_space<vmem>>, %arg2: memref<32x128xf32, #tpu.memory_space<vmem>>, %arg3: memref<32x128xf32, #tpu.memory_space<vmem>>, %arg4: memref<32x128xf32, #tpu.memory_space<vmem>>) attributes {dimension_semantics = [#tpu.dimension_semantics<parallel>], iteration_bounds = array<i64: 1>, scalar_prefetch = 0 : i64, scratch_operands = 0 : i64, tpu.core_type = #tpu.core_type<tc>, window_params = [{transform_indices = @transform_0, window_bounds = array<i64: 32, 32>}, {pipeline_mode = #tpu.pipeline_mode<synchronous>, transform_indices = @transform_1, window_bounds = array<i64: 32, 128>}, {transform_indices = @transform_2, window_bounds = array<i64: 32, 128>}, {transform_indices = @transform_3, window_bounds = array<i64: 32, 128>}]} {
    %c0 = arith.constant 0 : index
    %c0_0 = arith.constant 0 : index
    %0 = vector.load %arg1[%c0, %c0_0] : memref<32x32xf32, #tpu.memory_space<vmem>>, vector<32x32xf32>
    %c0_1 = arith.constant 0 : index
    %c0_2 = arith.constant 0 : index
    %1 = vector.load %arg2[%c0_1, %c0_2] : memref<32x128xf32, #tpu.memory_space<vmem>>, vector<32x128xf32>
    %cst = arith.constant dense<0.000000e+00> : vector<32x128xf32>
    %2 = tpu.matmul %0, %1, %cst {dimension_numbers = #tpu.dot_dimension_numbers<[1], [0], [0], [1], [0, 0, 1, 1], [], []>} : vector<32x32xf32>, vector<32x128xf32>, vector<32x128xf32> -> vector<32x128xf32>
    %c0_3 = arith.constant 0 : index
    %c0_4 = arith.constant 0 : index
    %3 = vector.load %arg3[%c0_3, %c0_4] : memref<32x128xf32, #tpu.memory_space<vmem>>, vector<32x128xf32>
    %4 = arith.addf %2, %3 : vector<32x128xf32>
    %c0_5 = arith.constant 0 : index
    %c0_6 = arith.constant 0 : index
    %5 = vector.load %arg4[%c0_5, %c0_6] : memref<32x128xf32, #tpu.memory_space<vmem>>, vector<32x128xf32>
    tpu.vector_store %arg4[%c0_5, %c0_6], %4 {strides = array<i32>} : memref<32x128xf32, #tpu.memory_space<vmem>>, vector<32x128xf32>,
    return
  }
  func.func @transform_0(%arg0: i32) -> (i32, i32) {
    %c0_i32 = arith.constant 0 : i32
    %c0_i32_0 = arith.constant 0 : i32
    return %arg0, %c0_i32 : i32, i32
  }
  func.func @transform_1(%arg0: i32) -> (i32, i32) {
    %c0_i32 = arith.constant 0 : i32
    %c0_i32_0 = arith.constant 0 : i32
    %c0_i32_1 = arith.constant 0 : i32
    return %c0_i32, %c0_i32_0 : i32, i32
  }
  func.func @transform_2(%arg0: i32) -> (i32, i32) {
    %c0_i32 = arith.constant 0 : i32
    %c0_i32_0 = arith.constant 0 : i32
    return %arg0, %c0_i32 : i32, i32
  }
  func.func @transform_3(%arg0: i32) -> (i32, i32) {
    %c0_i32 = arith.constant 0 : i32
    %c0_i32_0 = arith.constant 0 : i32
    return %arg0, %c0_i32 : i32, i32
  }
}

module attributes {stable_mosaic.version = 11 : i64} {
  func.func @_tl_kernel_bias(%arg0: i32, %arg1: memref<32x32xf32, #tpu.memory_space<vmem>>, %arg2: memref<32x128xf32, #tpu.memory_space<vmem>>, %arg3: memref<32x128xf32, #tpu.memory_space<vmem>>, %arg4: memref<32x128xf32, #tpu.memory_space<vmem>>) attributes {dimension_semantics = [#tpu.dimension_semantics<parallel>], iteration_bounds = array<i64: 1>, scalar_prefetch = 0 : i64, scratch_operands = 0 : i64, tpu.core_type = #tpu.core_type<tc>, window_params = [{transform_indices = @transform_0, window_bounds = array<i64: 32, 32>}, {pipeline_mode = #tpu.pipeline_mode<synchronous>, transform_indices = @transform_1, window_bounds = array<i64: 32, 128>}, {transform_indices = @transform_2, window_bounds = array<i64: 32, 128>}, {transform_indices = @transform_3, window_bounds = array<i64: 32, 128>}]} {
    %c0 = arith.constant 0 : index
    %c0_0 = arith.constant 0 : index
    %0 = vector.load %arg1[%c0, %c0_0] : memref<32x32xf32, #tpu.memory_space<vmem>>, vector<32x32xf32>
    %c0_1 = arith.constant 0 : index
    %c0_2 = arith.constant 0 : index
    %1 = vector.load %arg2[%c0_1, %c0_2] : memref<32x128xf32, #tpu.memory_space<vmem>>, vector<32x128xf32>
    %cst = arith.constant dense<0.000000e+00> : vector<32x128xf32>
    %2 = tpu.matmul %0, %1, %cst {dimension_numbers = #tpu.dot_dimension_numbers<[1], [0], [0], [1], [0, 0, 1, 1], [], []>} : vector<32x32xf32>, vector<32x128xf32>, vector<32x128xf32> -> vector<32x128xf32>
    %c0_3 = arith.constant 0 : index
    %c0_4 = arith.constant 0 : index
    %3 = vector.load %arg3[%c0_3, %c0_4] : memref<32x128xf32, #tpu.memory_space<vmem>>, vector<32x128xf32>
    %4 = arith.addf %2, %3 : vector<32x128xf32>
    %c0_5 = arith.constant 0 : index
    %c0_6 = arith.constant 0 : index
    %5 = vector.load %arg4[%c0_5, %c0_6] : memref<32x128xf32, #tpu.memory_space<vmem>>, vector<32x128xf32>
    tpu.vector_store %arg4[%c0_5, %c0_6], %4 {strides = array<i32>} : memref<32x128xf32, #tpu.memory_space<vmem>>, vector<32x128xf32>,
    return
  }
  func.func @transform_0(%arg0: i32) -> (i32, i32) {
    %c0_i32 = arith.constant 0 : i32
    %c0_i32_0 = arith.constant 0 : i32
    return %arg0, %c0_i32 : i32, i32
  }
  func.func @transform_1(%arg0: i32) -> (i32, i32) {
    %c0_i32 = arith.constant 0 : i32
    %c0_i32_0 = arith.constant 0 : i32
    %c0_i32_1 = arith.constant 0 : i32
    return %c0_i32, %c0_i32_0 : i32, i32
  }
  func.func @transform_2(%arg0: i32) -> (i32, i32) {
    %c0_i32 = arith.constant 0 : i32
    %c0_i32_0 = arith.constant 0 : i32
    return %arg0, %c0_i32 : i32, i32
  }
  func.func @transform_3(%arg0: i32) -> (i32, i32) {
    %c0_i32 = arith.constant 0 : i32
    %c0_i32_0 = arith.constant 0 : i32
    return %arg0, %c0_i32 : i32, i32
  }
}

</mosaic_0001>

<bundles_post_ra>
// kernel: tpu_custom_call.1
= control target key start
LH: loop header
LB: loop body
LE: loop exit
PB: predicated region body
PF: predicated region fallthrough
CT: control target
= control target key end

     0   :  { %8 = vsyncpa [#allocation3], 0  ;;  %s423_s0 = inlined_call_operand.hbm [shape: f32[32,32], index: 0, kind: input, shape index: {}]   ;;  %s424_s1 = inlined_call_operand.hbm [shape: f32[32,128], index: 1, kind: input, shape index: {}]   ;;  %s425_s2 = inlined_call_operand.hbm [shape: f32[32,128], index: 2, kind: input, shape index: {}]   ;;  %s426_s3 = inlined_call_operand.hbm [shape: f32[32,128], index: 3, kind: output, shape index: {}]  }
   0x1   :  { %9 = vsyncpa [#allocation6], 0 }
   0x2   :  { %10 = vsyncpa [#allocation4], 0  ;;  %s326_s12 = smov [#allocation5]   ;;  %s327_s14 = smov [#allocation2]  }
   0x3   :  { %s28_s13 = sshll.u32 %s326_s12, 4  ;;  %s16_s15 = sshll.u32 %s327_s14, 4  ;;  %s29_s13 = int_to_ptr.vmem [resolvable:$true] %s28_s13  ;;  %s352_s15 = int_to_ptr.vmem [resolvable:$true] %s16_s15 }
   0x4   :  { %s232_s18 = scalar_lea.hbm %s424_s1, 512 }
   0x5   :  { %p233_p0 = scmp.ne.s32.totalorder %s424_s1, %s232_s18  ;;  %p236_p1 = scmp.lt.u32.totalorder %s232_s18, %s424_s1 }
   0x7   :  { %p238_p2 = pnand %p236_p1, %p233_p0 }
   0x9   :  { %241 = shalt.err (!%p238_p2)
}
   0xa   :  { %s242_s23 = scalar_lea.vmem %s29_s13, 512  ;;  %p247_p4 = scmp.lt.s32.totalorder %s29_s13, %s29_s13 }
   0xb   :  { %p243_p3 = scmp.ne.s32.totalorder %s29_s13, %s242_s23  ;;  %p248_p5 = scmp.lt.s32.totalorder %s242_s23, %s242_s23 }
   0xd   :  { %p249_p6 = por %p248_p5, %p247_p4 }
   0xf   :  { %p250_p7 = pnand %p249_p6, %p243_p3 }
  0x11   :  { %253 = shalt.err (!%p250_p7)
}
  0x12   :  { %s328_s24 = smov 128   ;;  %s329_s25 = smov 8  }
  0x13   :  { %34 = dma.hbm_to_vmem [thread:$0]  %s424_s1, 512, %s29_s13, [#allocation6], %s328_s24, %s328_s24, %s329_s25  }
  0x14   :  { %s254_s30 = scalar_lea.hbm %s423_s0, 512 }
  0x15   :  { %p255_p8 = scmp.ne.s32.totalorder %s423_s0, %s254_s30  ;;  %p258_p9 = scmp.lt.u32.totalorder %s254_s30, %s423_s0 }
  0x17   :  { %p260_p10 = pnand %p258_p9, %p255_p8 }
  0x19   :  { %263 = shalt.err (!%p260_p10)
}
  0x1a   :  { %s264_s8 = scalar_lea.vmem %s352_s15, 512  ;;  %p269_p12 = scmp.lt.s32.totalorder %s352_s15, %s352_s15 }
  0x1b   :  { %p265_p11 = scmp.ne.s32.totalorder %s352_s15, %s264_s8  ;;  %p270_p13 = scmp.lt.s32.totalorder %s264_s8, %s264_s8 }
  0x1d   :  { %p271_p0 = por %p270_p13, %p269_p12 }
  0x1f   :  { %p272_p1 = pnand %p271_p0, %p265_p11 }
  0x21   :  { %275 = shalt.err (!%p272_p1)
}
  0x22   :  { %22 = dma.hbm_to_vmem [thread:$0]  %s423_s0, 512, %s352_s15, [#allocation3], %s328_s24, %s328_s24, %s329_s25  }
  0x23   :  { %s330_s10 = smov [#allocation7]   ;;  %s276_s14 = scalar_lea.hbm %s425_s2, 512 }
  0x24   :  { %s40_s11 = sshll.u32 %s330_s10, 4  ;;  %p277_p2 = scmp.ne.s32.totalorder %s425_s2, %s276_s14  ;;  %s41_s11 = int_to_ptr.vmem [resolvable:$true] %s40_s11 }
  0x25   :  { %p280_p3 = scmp.lt.u32.totalorder %s276_s14, %s425_s2 }
  0x27   :  { %p282_p4 = pnand %p280_p3, %p277_p2 }
  0x29   :  { %285 = shalt.err (!%p282_p4)
}
  0x2a   :  { %s286_s20 = scalar_lea.vmem %s41_s11, 512  ;;  %p291_p6 = scmp.lt.s32.totalorder %s41_s11, %s41_s11 }
  0x2b   :  { %p287_p5 = scmp.ne.s32.totalorder %s41_s11, %s286_s20  ;;  %p292_p7 = scmp.lt.s32.totalorder %s286_s20, %s286_s20 }
  0x2d   :  { %p293_p8 = por %p292_p7, %p291_p6 }
  0x2f   :  { %p294_p9 = pnand %p293_p8, %p287_p5 }
  0x31   :  { %297 = shalt.err (!%p294_p9)
}
  0x32   :  { %46 = dma.hbm_to_vmem [thread:$0]  %s425_s2, 512, %s41_s11, [#allocation6], %s328_s24, %s328_s24, %s329_s25  }
  0x33   :  { %320 = dma.done.wait [#allocation3], 512  }
  0x34   :  { %321 = vsyncadd [#allocation3], 4294966784 }
  0x35   :  { %322 = dma.done.wait [#allocation6], 1024  }
  0x36   :  { %323 = vsyncadd [#allocation6], 4294966272  ;;  %vm68_vm0 = vcmask 261120   ;;  %v60_v0 = vld [vmem:[#allocation5] sm:$0xff]  ;;  %v61_v1 = vld [vmem:[#allocation5 + $0x8] sm:$0xff]  ;;  %s331_s2 = smov [#allocation8]  }
  0x37   :  { %v62_v2 = vld [vmem:[#allocation5 + $0x10] sm:$0xff]  ;;  %v214_v3 = vpack.c.bf16 %v61_v1, %v60_v0  ;;  %v63_v4 = vld [vmem:[#allocation5 + $0x18] sm:$0xff]  ;;  %v56_v5 = vld [vmem:[#allocation2] sm:$0xff]  ;;  %s175_s21 = sshll.u32 %s331_s2, 4  ;;  %s176_s21 = int_to_ptr.vmem [resolvable:$true] %s175_s21 }
  0x38   :  { %v58_v6 = vld [vmem:[#allocation2 + $0x10] sm:$0xff]  ;;  %v218_v7 = vpack.c.bf16 %v63_v4, %v62_v2  ;;  %208 = vmatprep.mubr.msk.f32.mxu0 %vm68_vm0, %v56_v5  ;;  %v57_v8 = vld [vmem:[#allocation2 + $0x8] sm:$0xff]  ;;  %v59_v9 = vld [vmem:[#allocation2 + $0x18] sm:$0xff]  ;;  %s298_s22 = scalar_lea.vmem %s176_s21, 512  ;;  %p303_p11 = scmp.lt.s32.totalorder %s176_s21, %s176_s21 }
  0x39   :  { %211 = vmatprep.mubr.msk.f32.mxu1 %vm68_vm0, %v58_v6  ;;  %215 = vmatprep.subr.bf16.mxu0 %v214_v3  ;;  %v65_v10 = vld [vmem:[#allocation7 + $0x8] sm:$0xff]  ;;  %v67_v11 = vld [vmem:[#allocation7 + $0x18] sm:$0xff]  ;;  %v64_v12 = vld [vmem:[#allocation7] sm:$0xff]  ;;  %p299_p10 = scmp.ne.s32.totalorder %s176_s21, %s298_s22  ;;  %p304_p12 = scmp.lt.s32.totalorder %s298_s22, %s298_s22 }
  0x3a   :  { %222 = vmatprep.subr.bf16.mxu1 %v214_v3  ;;  %217 = vmatpush3.bf16.msra.mxu0 %v214_v3  ;;  %v66_v13 = vld [vmem:[#allocation7 + $0x10] sm:$0xff] }
  0x3b   :  { %224 = vmatpush3.bf16.msra.mxu1 %v214_v3  ;;  %219 = vmatprep.subr.bf16.mxu0 %v218_v7  ;;  %p305_p13 = por %p304_p12, %p303_p11 }
  0x3c   :  { %223 = vmatprep.subr.bf16.mxu1 %v218_v7 }
  0x3d   :  { %p306_p0 = pnand %p305_p13, %p299_p10 }
  0x3e   :  { %221 = vmatpush3.bf16.msra.mxu0 %v218_v7 }
  0x3f   :  { %225 = vmatpush3.bf16.msra.mxu1 %v218_v7 }
  0x41   :  { %209 = vmatmul.mubr.msk.f32.vlgmr.msra.gmra.mrb[0].mxu0 %vm68_vm0, %v57_v8 }
  0x42   :  { %212 = vmatmul.mubr.msk.f32.vlgmr.msra.gmra.mrb[0].mxu1 %vm68_vm0, %v59_v9 }
 0x114   :  { %v210_v14 = vpop.f32.mrb[0].mxu0 }
 0x115   :  { %v213_v15 = vpop.f32.mrb[0].mxu1  ;;  %v153_v16 = vadd.f32 %v210_v14, %v65_v10  ;;  %v147_v18 = vpop.f32.mrb[1].mxu0 }
 0x116   :  { %v163_v17 = vadd.f32 %v213_v15, %v67_v11  ;;  %v157_v19 = vpop.f32.mrb[1].mxu1  ;;  %v148_v20 = vadd.f32 %v147_v18, %v64_v12 }
 0x117   :  { %v158_v21 = vadd.f32 %v157_v19, %v66_v13  ;;  %167 = vst [vmem:[#allocation8 + $0x8] sm:$0xff] %v153_v16 }
 0x118   :  { %169 = vst [vmem:[#allocation8 + $0x18] sm:$0xff] %v163_v17  ;;  %166 = vst [vmem:[#allocation8] sm:$0xff] %v148_v20 }
 0x119   :  { %168 = vst [vmem:[#allocation8 + $0x10] sm:$0xff] %v158_v21 }
 0x11a   :  { %309 = shalt.err (!%p306_p0)
}
 0x11b   :  { %s310_s27 = scalar_lea.hbm %s426_s3, 512 }
 0x11c   :  { %p311_p1 = scmp.ne.s32.totalorder %s426_s3, %s310_s27  ;;  %p314_p2 = scmp.lt.u32.totalorder %s310_s27, %s426_s3 }
 0x11e   :  { %p316_p3 = pnand %p314_p2, %p311_p1 }
 0x120   :  { %319 = shalt.err (!%p316_p3)
}
 0x121   :  { %181 = dma.vmem_to_hbm [thread:$0]  %s176_s21, 512, %s426_s3, [#allocation4], %s328_s24, %s328_s24, %s329_s25  }
 0x122   :  { %324 = dma.done.wait [#allocation4], 512  }
 0x123   :  { %325 = vsyncadd [#allocation4], 4294966784 }
 0x124   :  { %185 = vsyncpa [#allocation3], 1 }
 0x125   :  { %186 = vsyncpa [#allocation6], 1 }
 0x126   :  { %187 = vsyncpa [#allocation4], 1 }

// kernel: tpu_custom_call.1
= control target key start
LH: loop header
LB: loop body
LE: loop exit
PB: predicated region body
PF: predicated region fallthrough
CT: control target
= control target key end

     0   :  { %8 = vsyncpa [#allocation3], 0  ;;  %s423_s0 = inlined_call_operand.hbm [shape: f32[32,32], index: 0, kind: input, shape index: {}]   ;;  %s424_s1 = inlined_call_operand.hbm [shape: f32[32,128], index: 1, kind: input, shape index: {}]   ;;  %s425_s2 = inlined_call_operand.hbm [shape: f32[32,128], index: 2, kind: input, shape index: {}]   ;;  %s426_s3 = inlined_call_operand.hbm [shape: f32[32,128], index: 3, kind: output, shape index: {}]  }
   0x1   :  { %9 = vsyncpa [#allocation6], 0 }
   0x2   :  { %10 = vsyncpa [#allocation4], 0  ;;  %s326_s12 = smov [#allocation5]   ;;  %s327_s14 = smov [#allocation2]  }
   0x3   :  { %s28_s13 = sshll.u32 %s326_s12, 4  ;;  %s16_s15 = sshll.u32 %s327_s14, 4  ;;  %s29_s13 = int_to_ptr.vmem [resolvable:$true] %s28_s13  ;;  %s352_s15 = int_to_ptr.vmem [resolvable:$true] %s16_s15 }
   0x4   :  { %s232_s18 = scalar_lea.hbm %s424_s1, 512 }
   0x5   :  { %p233_p0 = scmp.ne.s32.totalorder %s424_s1, %s232_s18  ;;  %p236_p1 = scmp.lt.u32.totalorder %s232_s18, %s424_s1 }
   0x7   :  { %p238_p2 = pnand %p236_p1, %p233_p0 }
   0x9   :  { %241 = shalt.err (!%p238_p2)
}
   0xa   :  { %s242_s23 = scalar_lea.vmem %s29_s13, 512  ;;  %p247_p4 = scmp.lt.s32.totalorder %s29_s13, %s29_s13 }
   0xb   :  { %p243_p3 = scmp.ne.s32.totalorder %s29_s13, %s242_s23  ;;  %p248_p5 = scmp.lt.s32.totalorder %s242_s23, %s242_s23 }
   0xd   :  { %p249_p6 = por %p248_p5, %p247_p4 }
   0xf   :  { %p250_p7 = pnand %p249_p6, %p243_p3 }
  0x11   :  { %253 = shalt.err (!%p250_p7)
}
  0x12   :  { %s328_s24 = smov 128   ;;  %s329_s25 = smov 8  }
  0x13   :  { %34 = dma.hbm_to_vmem [thread:$0]  %s424_s1, 512, %s29_s13, [#allocation6], %s328_s24, %s328_s24, %s329_s25  }
  0x14   :  { %s254_s30 = scalar_lea.hbm %s423_s0, 512 }
  0x15   :  { %p255_p8 = scmp.ne.s32.totalorder %s423_s0, %s254_s30  ;;  %p258_p9 = scmp.lt.u32.totalorder %s254_s30, %s423_s0 }
  0x17   :  { %p260_p10 = pnand %p258_p9, %p255_p8 }
  0x19   :  { %263 = shalt.err (!%p260_p10)
}
  0x1a   :  { %s264_s8 = scalar_lea.vmem %s352_s15, 512  ;;  %p269_p12 = scmp.lt.s32.totalorder %s352_s15, %s352_s15 }
  0x1b   :  { %p265_p11 = scmp.ne.s32.totalorder %s352_s15, %s264_s8  ;;  %p270_p13 = scmp.lt.s32.totalorder %s264_s8, %s264_s8 }
  0x1d   :  { %p271_p0 = por %p270_p13, %p269_p12 }
  0x1f   :  { %p272_p1 = pnand %p271_p0, %p265_p11 }
  0x21   :  { %275 = shalt.err (!%p272_p1)
}
  0x22   :  { %22 = dma.hbm_to_vmem [thread:$0]  %s423_s0, 512, %s352_s15, [#allocation3], %s328_s24, %s328_s24, %s329_s25  }
  0x23   :  { %s330_s10 = smov [#allocation7]   ;;  %s276_s14 = scalar_lea.hbm %s425_s2, 512 }
  0x24   :  { %s40_s11 = sshll.u32 %s330_s10, 4  ;;  %p277_p2 = scmp.ne.s32.totalorder %s425_s2, %s276_s14  ;;  %s41_s11 = int_to_ptr.vmem [resolvable:$true] %s40_s11 }
  0x25   :  { %p280_p3 = scmp.lt.u32.totalorder %s276_s14, %s425_s2 }
  0x27   :  { %p282_p4 = pnand %p280_p3, %p277_p2 }
  0x29   :  { %285 = shalt.err (!%p282_p4)
}
  0x2a   :  { %s286_s20 = scalar_lea.vmem %s41_s11, 512  ;;  %p291_p6 = scmp.lt.s32.totalorder %s41_s11, %s41_s11 }
  0x2b   :  { %p287_p5 = scmp.ne.s32.totalorder %s41_s11, %s286_s20  ;;  %p292_p7 = scmp.lt.s32.totalorder %s286_s20, %s286_s20 }
  0x2d   :  { %p293_p8 = por %p292_p7, %p291_p6 }
  0x2f   :  { %p294_p9 = pnand %p293_p8, %p287_p5 }
  0x31   :  { %297 = shalt.err (!%p294_p9)
}
  0x32   :  { %46 = dma.hbm_to_vmem [thread:$0]  %s425_s2, 512, %s41_s11, [#allocation6], %s328_s24, %s328_s24, %s329_s25  }
  0x33   :  { %320 = dma.done.wait [#allocation3], 512  }
  0x34   :  { %321 = vsyncadd [#allocation3], 4294966784 }
  0x35   :  { %322 = dma.done.wait [#allocation6], 1024  }
  0x36   :  { %323 = vsyncadd [#allocation6], 4294966272  ;;  %vm68_vm0 = vcmask 261120   ;;  %v60_v0 = vld [vmem:[#allocation5] sm:$0xff]  ;;  %v61_v1 = vld [vmem:[#allocation5 + $0x8] sm:$0xff]  ;;  %s331_s2 = smov [#allocation8]  }
  0x37   :  { %v62_v2 = vld [vmem:[#allocation5 + $0x10] sm:$0xff]  ;;  %v214_v3 = vpack.c.bf16 %v61_v1, %v60_v0  ;;  %v63_v4 = vld [vmem:[#allocation5 + $0x18] sm:$0xff]  ;;  %v56_v5 = vld [vmem:[#allocation2] sm:$0xff]  ;;  %s175_s21 = sshll.u32 %s331_s2, 4  ;;  %s176_s21 = int_to_ptr.vmem [resolvable:$true] %s175_s21 }
  0x38   :  { %v58_v6 = vld [vmem:[#allocation2 + $0x10] sm:$0xff]  ;;  %v218_v7 = vpack.c.bf16 %v63_v4, %v62_v2  ;;  %208 = vmatprep.mubr.msk.f32.mxu0 %vm68_vm0, %v56_v5  ;;  %v57_v8 = vld [vmem:[#allocation2 + $0x8] sm:$0xff]  ;;  %v59_v9 = vld [vmem:[#allocation2 + $0x18] sm:$0xff]  ;;  %s298_s22 = scalar_lea.vmem %s176_s21, 512  ;;  %p303_p11 = scmp.lt.s32.totalorder %s176_s21, %s176_s21 }
  0x39   :  { %211 = vmatprep.mubr.msk.f32.mxu1 %vm68_vm0, %v58_v6  ;;  %215 = vmatprep.subr.bf16.mxu0 %v214_v3  ;;  %v65_v10 = vld [vmem:[#allocation7 + $0x8] sm:$0xff]  ;;  %v67_v11 = vld [vmem:[#allocation7 + $0x18] sm:$0xff]  ;;  %v64_v12 = vld [vmem:[#allocation7] sm:$0xff]  ;;  %p299_p10 = scmp.ne.s32.totalorder %s176_s21, %s298_s22  ;;  %p304_p12 = scmp.lt.s32.totalorder %s298_s22, %s298_s22 }
  0x3a   :  { %222 = vmatprep.subr.bf16.mxu1 %v214_v3  ;;  %217 = vmatpush3.bf16.msra.mxu0 %v214_v3  ;;  %v66_v13 = vld [vmem:[#allocation7 + $0x10] sm:$0xff] }
  0x3b   :  { %224 = vmatpush3.bf16.msra.mxu1 %v214_v3  ;;  %219 = vmatprep.subr.bf16.mxu0 %v218_v7  ;;  %p305_p13 = por %p304_p12, %p303_p11 }
  0x3c   :  { %223 = vmatprep.subr.bf16.mxu1 %v218_v7 }
  0x3d   :  { %p306_p0 = pnand %p305_p13, %p299_p10 }
  0x3e   :  { %221 = vmatpush3.bf16.msra.mxu0 %v218_v7 }
  0x3f   :  { %225 = vmatpush3.bf16.msra.mxu1 %v218_v7 }
  0x41   :  { %209 = vmatmul.mubr.msk.f32.vlgmr.msra.gmra.mrb[0].mxu0 %vm68_vm0, %v57_v8 }
  0x42   :  { %212 = vmatmul.mubr.msk.f32.vlgmr.msra.gmra.mrb[0].mxu1 %vm68_vm0, %v59_v9 }
 0x114   :  { %v210_v14 = vpop.f32.mrb[0].mxu0 }
 0x115   :  { %v213_v15 = vpop.f32.mrb[0].mxu1  ;;  %v153_v16 = vadd.f32 %v210_v14, %v65_v10  ;;  %v147_v18 = vpop.f32.mrb[1].mxu0 }
 0x116   :  { %v163_v17 = vadd.f32 %v213_v15, %v67_v11  ;;  %v157_v19 = vpop.f32.mrb[1].mxu1  ;;  %v148_v20 = vadd.f32 %v147_v18, %v64_v12 }
 0x117   :  { %v158_v21 = vadd.f32 %v157_v19, %v66_v13  ;;  %167 = vst [vmem:[#allocation8 + $0x8] sm:$0xff] %v153_v16 }
 0x118   :  { %169 = vst [vmem:[#allocation8 + $0x18] sm:$0xff] %v163_v17  ;;  %166 = vst [vmem:[#allocation8] sm:$0xff] %v148_v20 }
 0x119   :  { %168 = vst [vmem:[#allocation8 + $0x10] sm:$0xff] %v158_v21 }
 0x11a   :  { %309 = shalt.err (!%p306_p0)
}
 0x11b   :  { %s310_s27 = scalar_lea.hbm %s426_s3, 512 }
 0x11c   :  { %p311_p1 = scmp.ne.s32.totalorder %s426_s3, %s310_s27  ;;  %p314_p2 = scmp.lt.u32.totalorder %s310_s27, %s426_s3 }
 0x11e   :  { %p316_p3 = pnand %p314_p2, %p311_p1 }
 0x120   :  { %319 = shalt.err (!%p316_p3)
}
 0x121   :  { %181 = dma.vmem_to_hbm [thread:$0]  %s176_s21, 512, %s426_s3, [#allocation4], %s328_s24, %s328_s24, %s329_s25  }
 0x122   :  { %324 = dma.done.wait [#allocation4], 512  }
 0x123   :  { %325 = vsyncadd [#allocation4], 4294966784 }
 0x124   :  { %185 = vsyncpa [#allocation3], 1 }
 0x125   :  { %186 = vsyncpa [#allocation6], 1 }
 0x126   :  { %187 = vsyncpa [#allocation4], 1 }

</bundles_post_ra>
